<compile_context>
chip_gen: v5e
topology: v5e:2x2
jax: 0.10.0
libtpu: 0.0.40
codegen_flags: <defaults>
</compile_context>

<pallas_src>
import functools

import jax
import jax.numpy as jnp
from jax.experimental import pallas as pl
from jax.experimental.pallas import tpu as pltpu


# -------------------- kernels --------------------

def _bmm_kernel(mention_ref, head_ref, tail_ref, w_ref, b_ref, out_ref, *,
                scaling, D):
    """use_sentence_negatives == False branch.

    mention_ref : (tb, D)
    head_ref    : (tb, N, D)
    tail_ref    : (tb, N, D)
    w_ref       : (D, 2D)   torch Linear weight, untransposed, grid-resident
    b_ref       : (1, D)    bias, grid-resident
    out_ref     : (tb, N)
    """
    m = mention_ref[...]                                         # (tb, D)
    # Project mention through the linear layer's adjoint: one MXU matmul
    # per mention tile instead of two per candidate row.
    proj = jnp.dot(m, w_ref[...], preferred_element_type=jnp.float32)  # (tb, 2D)
    ph = proj[:, :D]                                             # (tb, D)  f32
    pt = proj[:, D:]                                             # (tb, D)  f32
    bias = b_ref[...].astype(jnp.float32)                        # (1, D)
    bm = jnp.sum(m * bias, axis=-1, keepdims=True)               # (tb, 1)  f32

    # Per-candidate work: VPU multiply + lane reduce (promotes to f32 via ph/pt).
    s_h = jnp.sum(head_ref[...] * ph[:, None, :], axis=-1)       # (tb, N)
    s_t = jnp.sum(tail_ref[...] * pt[:, None, :], axis=-1)       # (tb, N)

    out_ref[...] = (scaling * (s_h + s_t + bm)).astype(out_ref.dtype)


def _sent_kernel(mention_ref, head_ref, tail_ref, w_ref, b_ref, out_ref, y_ref,
                 *, scaling, D):
    """use_sentence_negatives == True branch.

    mention_ref : (tj, D)   column tile (j axis of the (B, B) output)
    head_ref    : (ti, D)   row tile (candidate axis already squeezed)
    tail_ref    : (ti, D)
    w_ref       : (D, 2D)   grid-resident
    b_ref       : (1, D)    grid-resident
    out_ref     : (ti, tj)
    y_ref       : (ti, D)   f32 VMEM scratch caching the projected row tile
    """
    # Compute y = h @ W[:, :D].T + t @ W[:, D:].T + b once per row tile and
    # reuse it for every column tile.
    @pl.when(pl.program_id(1) == 0)
    def _():
        h = head_ref[...]
        t = tail_ref[...]
        yh = jax.lax.dot_general(h, w_ref[:, :D], (((1,), (1,)), ((), ())),
                                 preferred_element_type=jnp.float32)
        yt = jax.lax.dot_general(t, w_ref[:, D:], (((1,), (1,)), ((), ())),
                                 preferred_element_type=jnp.float32)
        y_ref[...] = yh + yt + b_ref[...].astype(jnp.float32)

    m = mention_ref[...].astype(jnp.float32)                     # (tj, D)
    out = jax.lax.dot_general(y_ref[...], m, (((1,), (1,)), ((), ())),
                              preferred_element_type=jnp.float32)  # (ti, tj)
    out_ref[...] = (scaling * out).astype(out_ref.dtype)


# -------------------- tile helpers --------------------

def _pick_row_tile(n, cap=256):
    """Largest multiple-of-8 divisor of n that is <= cap (or n itself)."""
    if n <= cap:
        return n
    t = cap - (cap % 8)
    while t >= 8:
        if n % t == 0:
            return t
        t -= 8
    return n


def _pick_col_tile(n, cap=512):
    """Column (lane) tile: multiple of 128 dividing n, or the full dim."""
    if n <= cap or n % 128 != 0:
        return n
    t = (cap // 128) * 128
    while t >= 128:
        if n % t == 0:
            return t
        t -= 128
    return n


# -------------------- wrapper --------------------

def concat_linear_dot(mention, head, tail, weight, bias, *,
                      use_sentence_negatives, row_tile=None, col_tile=None,
                      vmem_limit_bytes=32 * 1024 * 1024):
    """Pallas implementation of ConcatLinearDot.forward.

    mention: (B, D); head/tail: (B, N, D); weight: torch (D, 2D); bias: (D,).
    """
    B, D = mention.shape
    scaling = float(D) ** -0.5
    b2 = bias.reshape(1, D)           # 2-D bias for SMEM/VMEM friendliness
    out_dtype = mention.dtype

    if use_sentence_negatives:
        # head/tail are (B, 1, D): squeeze(1) is pure glue.
        h2 = head.reshape(B, D)
        t2 = tail.reshape(B, D)
        ti = row_tile if row_tile is not None else _pick_row_tile(B)
        tj = col_tile if col_tile is not None else _pick_col_tile(B)
        assert B % ti == 0 and B % tj == 0, "row/col tiles must divide B"
        grid = (B // ti, B // tj)
        kernel = functools.partial(_sent_kernel, scaling=scaling, D=D)
        return pl.pallas_call(
            kernel,
            grid=grid,
            in_specs=[
                pl.BlockSpec((tj, D), lambda i, j: (j, 0)),        # mention cols
                pl.BlockSpec((ti, D), lambda i, j: (i, 0)),        # head rows
                pl.BlockSpec((ti, D), lambda i, j: (i, 0)),        # tail rows
                pl.BlockSpec((D, 2 * D), lambda i, j: (0, 0)),     # weight (resident)
                pl.BlockSpec((1, D), lambda i, j: (0, 0)),         # bias   (resident)
            ],
            out_specs=pl.BlockSpec((ti, tj), lambda i, j: (i, j)),
            out_shape=jax.ShapeDtypeStruct((B, B), out_dtype),
            scratch_shapes=[pltpu.VMEM((ti, D), jnp.float32)],     # cached y tile
            compiler_params=pltpu.CompilerParams(
                dimension_semantics=("parallel", "arbitrary"),
                vmem_limit_bytes=vmem_limit_bytes),
        )(mention, h2, t2, weight, b2)

    else:
        _, N, _ = head.shape
        tb = row_tile if row_tile is not None else _pick_row_tile(B)
        assert B % tb == 0, "row tile must divide B"
        grid = (B // tb,)
        kernel = functools.partial(_bmm_kernel, scaling=scaling, D=D)
        return pl.pallas_call(
            kernel,
            grid=grid,
            in_specs=[
                pl.BlockSpec((tb, D), lambda i: (i, 0)),           # mention
                pl.BlockSpec((tb, N, D), lambda i: (i, 0, 0)),     # head
                pl.BlockSpec((tb, N, D), lambda i: (i, 0, 0)),     # tail
                pl.BlockSpec((D, 2 * D), lambda i: (0, 0)),        # weight (resident)
                pl.BlockSpec((1, D), lambda i: (0, 0)),            # bias   (resident)
            ],
            out_specs=pl.BlockSpec((tb, N), lambda i: (i, 0)),
            out_shape=jax.ShapeDtypeStruct((B, N), out_dtype),
            compiler_params=pltpu.CompilerParams(
                dimension_semantics=("parallel",),
                vmem_limit_bytes=vmem_limit_bytes),
        )(mention, head, tail, weight, b2)


# -------------------- pure-JAX reference (sanity check) --------------------

def _ref_forward(mention, head, tail, weight, bias, use_sentence_negatives):
    D = mention.shape[-1]
    scaling = float(D) ** -0.5
    ht = jnp.concatenate([head, tail], axis=-1)
    y = jnp.einsum('bnk,dk->bnd', ht, weight, precision='highest') + bias
    if use_sentence_negatives:
        return scaling * jnp.einsum('bd,cd->bc', y[:, 0, :], mention,
                                    precision='highest')
    return scaling * jnp.einsum('bnd,bd->bn', y, mention, precision='highest')


# -------------------- main --------------------

if __name__ == "__main__":
    key = jax.random.PRNGKey(0)
    k_m, k_h, k_t, k_w, k_b, k_ms, k_h1, k_t1 = jax.random.split(key, 8)

    D = 128  # entity_dim (lane-full)

    # deterministic "nn.Linear(2D, D)" parameters (synthetic, not a checkpoint)
    weight = 0.05 * jax.random.normal(k_w, (D, 2 * D), dtype=jnp.float32)
    bias = 0.01 * jax.random.normal(k_b, (D,), dtype=jnp.float32)

    # ---- branch: use_sentence_negatives = False (bmm path) ----
    B, N = 16, 8
    mention = jax.random.normal(k_m, (B, D), dtype=jnp.float32)
    head = jax.random.normal(k_h, (B, N, D), dtype=jnp.float32)
    tail = jax.random.normal(k_t, (B, N, D), dtype=jnp.float32)

    out_bmm = jax.block_until_ready(
        concat_linear_dot(mention, head, tail, weight, bias,
                          use_sentence_negatives=False, row_tile=8))
    ref_bmm = _ref_forward(mention, head, tail, weight, bias, False)
    assert out_bmm.shape == (B, N)
    assert jnp.allclose(out_bmm, ref_bmm, atol=2e-3, rtol=2e-3), \
        float(jnp.max(jnp.abs(out_bmm - ref_bmm)))

    # ---- branch: use_sentence_negatives = True (mention.t() path) ----
    Bs = 256
    mention_s = jax.random.normal(k_ms, (Bs, D), dtype=jnp.float32)
    head1 = jax.random.normal(k_h1, (Bs, 1, D), dtype=jnp.float32)
    tail1 = jax.random.normal(k_t1, (Bs, 1, D), dtype=jnp.float32)

    out_sent = jax.block_until_ready(
        concat_linear_dot(mention_s, head1, tail1, weight, bias,
                          use_sentence_negatives=True,
                          row_tile=128, col_tile=128))
    ref_sent = _ref_forward(mention_s, head1, tail1, weight, bias, True)
    assert out_sent.shape == (Bs, Bs)
    assert jnp.allclose(out_sent, ref_sent, atol=2e-3, rtol=2e-3), \
        float(jnp.max(jnp.abs(out_sent - ref_sent)))

    print("KERNEL_OK")
</pallas_src>

<mosaic_0001>
module attributes {stable_mosaic.version = 11 : i64} {
  func.func @_bmm_kernel(%arg0: i32, %arg1: memref<8x128xf32, #tpu.memory_space<vmem>>, %arg2: memref<8x8x128xf32, #tpu.memory_space<vmem>>, %arg3: memref<8x8x128xf32, #tpu.memory_space<vmem>>, %arg4: memref<128x256xf32, #tpu.memory_space<vmem>>, %arg5: memref<1x128xf32, #tpu.memory_space<vmem>>, %arg6: memref<8x8xf32, #tpu.memory_space<vmem>>) attributes {dimension_semantics = [#tpu.dimension_semantics<parallel>], iteration_bounds = array<i64: 2>, scalar_prefetch = 0 : i64, scratch_operands = 0 : i64, tpu.core_type = #tpu.core_type<tc>, window_params = [{transform_indices = @transform_0, window_bounds = array<i64: 8, 128>}, {transform_indices = @transform_1, window_bounds = array<i64: 8, 8, 128>}, {transform_indices = @transform_2, window_bounds = array<i64: 8, 8, 128>}, {pipeline_mode = #tpu.pipeline_mode<synchronous>, transform_indices = @transform_3, window_bounds = array<i64: 128, 256>}, {pipeline_mode = #tpu.pipeline_mode<synchronous>, transform_indices = @transform_4, window_bounds = array<i64: 1, 128>}, {transform_indices = @transform_5, window_bounds = array<i64: 8, 8>}]} {
    %c0 = arith.constant 0 : index
    %c0_0 = arith.constant 0 : index
    %0 = vector.load %arg1[%c0, %c0_0] : memref<8x128xf32, #tpu.memory_space<vmem>>, vector<8x128xf32>
    %c0_1 = arith.constant 0 : index
    %c0_2 = arith.constant 0 : index
    %1 = vector.load %arg4[%c0_1, %c0_2] : memref<128x256xf32, #tpu.memory_space<vmem>>, vector<128x256xf32>
    %cst = arith.constant dense<0.000000e+00> : vector<8x256xf32>
    %2 = tpu.matmul %0, %1, %cst {dimension_numbers = #tpu.dot_dimension_numbers<[1], [0], [0], [1], [0, 0, 1, 1], [], []>} : vector<8x128xf32>, vector<128x256xf32>, vector<8x256xf32> -> vector<8x256xf32>
    %3 = vector.extract_strided_slice %2 {offsets = [0, 0], sizes = [8, 128], strides = [1, 1]} : vector<8x256xf32> to vector<8x128xf32>
    %4 = vector.extract_strided_slice %2 {offsets = [0, 128], sizes = [8, 128], strides = [1, 1]} : vector<8x256xf32> to vector<8x128xf32>
    %c0_3 = arith.constant 0 : index
    %c0_4 = arith.constant 0 : index
    %5 = vector.load %arg5[%c0_3, %c0_4] : memref<1x128xf32, #tpu.memory_space<vmem>>, vector<1x128xf32>
    %6 = vector.broadcast %5 : vector<1x128xf32> to vector<8x128xf32>
    %7 = arith.mulf %0, %6 : vector<8x128xf32>
    %cst_5 = arith.constant dense<0.000000e+00> : vector<8xf32>
    %8 = vector.multi_reduction <add>, %7, %cst_5 [1] : vector<8x128xf32> to vector<8xf32>
    %9 = vector.shape_cast %8 : vector<8xf32> to vector<8x1xf32>
    %c0_6 = arith.constant 0 : index
    %c0_7 = arith.constant 0 : index
    %c0_8 = arith.constant 0 : index
    %10 = vector.load %arg2[%c0_6, %c0_7, %c0_8] : memref<8x8x128xf32, #tpu.memory_space<vmem>>, vector<8x8x128xf32>
    %11 = vector.shape_cast %3 : vector<8x128xf32> to vector<8x1x128xf32>
    %12 = vector.broadcast %11 : vector<8x1x128xf32> to vector<8x8x128xf32>
    %13 = arith.mulf %10, %12 : vector<8x8x128xf32>
    %cst_9 = arith.constant dense<0.000000e+00> : vector<8x8xf32>
    %14 = vector.multi_reduction <add>, %13, %cst_9 [2] : vector<8x8x128xf32> to vector<8x8xf32>
    %c0_10 = arith.constant 0 : index
    %c0_11 = arith.constant 0 : index
    %c0_12 = arith.constant 0 : index
    %15 = vector.load %arg3[%c0_10, %c0_11, %c0_12] : memref<8x8x128xf32, #tpu.memory_space<vmem>>, vector<8x8x128xf32>
    %16 = vector.shape_cast %4 : vector<8x128xf32> to vector<8x1x128xf32>
    %17 = vector.broadcast %16 : vector<8x1x128xf32> to vector<8x8x128xf32>
    %18 = arith.mulf %15, %17 : vector<8x8x128xf32>
    %cst_13 = arith.constant dense<0.000000e+00> : vector<8x8xf32>
    %19 = vector.multi_reduction <add>, %18, %cst_13 [2] : vector<8x8x128xf32> to vector<8x8xf32>
    %20 = arith.addf %14, %19 : vector<8x8xf32>
    %21 = vector.broadcast %9 : vector<8x1xf32> to vector<8x8xf32>
    %22 = arith.addf %20, %21 : vector<8x8xf32>
    %cst_14 = arith.constant 0.0883883461 : f32
    %23 = vector.broadcast %cst_14 : f32 to vector<8x8xf32>
    %24 = arith.mulf %23, %22 : vector<8x8xf32>
    %c0_15 = arith.constant 0 : index
    %c0_16 = arith.constant 0 : index
    %25 = vector.load %arg6[%c0_15, %c0_16] : memref<8x8xf32, #tpu.memory_space<vmem>>, vector<8x8xf32>
    tpu.vector_store %arg6[%c0_15, %c0_16], %24 {strides = array<i32>} : memref<8x8xf32, #tpu.memory_space<vmem>>, vector<8x8xf32>,
    return
  }
  func.func @transform_0(%arg0: i32) -> (i32, i32) {
    %c0_i32 = arith.constant 0 : i32
    %c0_i32_0 = arith.constant 0 : i32
    return %arg0, %c0_i32 : i32, i32
  }
  func.func @transform_1(%arg0: i32) -> (i32, i32, i32) {
    %c0_i32 = arith.constant 0 : i32
    %c0_i32_0 = arith.constant 0 : i32
    %c0_i32_1 = arith.constant 0 : i32
    return %arg0, %c0_i32, %c0_i32_0 : i32, i32, i32
  }
  func.func @transform_2(%arg0: i32) -> (i32, i32, i32) {
    %c0_i32 = arith.constant 0 : i32
    %c0_i32_0 = arith.constant 0 : i32
    %c0_i32_1 = arith.constant 0 : i32
    return %arg0, %c0_i32, %c0_i32_0 : i32, i32, i32
  }
  func.func @transform_3(%arg0: i32) -> (i32, i32) {
    %c0_i32 = arith.constant 0 : i32
    %c0_i32_0 = arith.constant 0 : i32
    %c0_i32_1 = arith.constant 0 : i32
    return %c0_i32, %c0_i32_0 : i32, i32
  }
  func.func @transform_4(%arg0: i32) -> (i32, i32) {
    %c0_i32 = arith.constant 0 : i32
    %c0_i32_0 = arith.constant 0 : i32
    %c0_i32_1 = arith.constant 0 : i32
    return %c0_i32, %c0_i32_0 : i32, i32
  }
  func.func @transform_5(%arg0: i32) -> (i32, i32) {
    %c0_i32 = arith.constant 0 : i32
    %c0_i32_0 = arith.constant 0 : i32
    return %arg0, %c0_i32 : i32, i32
  }
}

</mosaic_0001>

<bundles_post_ra>
// kernel: tpu_custom_call.1
= control target key start
LH: loop header
LB: loop body
LE: loop exit
PB: predicated region body
PF: predicated region fallthrough
CT: control target
= control target key end

     0   :  { %s1259_s0 = inlined_call_operand.hbm [shape: f32[16,128], index: 0, kind: input, shape index: {}]   ;;  %s1260_s1 = inlined_call_operand.hbm [shape: f32[16,8,128], index: 1, kind: input, shape index: {}]   ;;  %s1261_s2 = inlined_call_operand.hbm [shape: f32[16,8,128], index: 2, kind: input, shape index: {}]   ;;  %s1262_s3 = inlined_call_operand.hbm [shape: f32[128,256], index: 3, kind: input, shape index: {}]   ;;  %s1263_s4 = inlined_call_operand.vmem [shape: f32[1,128], index: 4, kind: input, shape index: {}]   ;;  %s1264_s5 = inlined_call_operand.vmem [shape: f32[16,8], index: 5, kind: output, shape index: {}]  }
   0x1   :  { %1267 = sst [smem:[#allocation13_spill]] %s1260_s1 }
   0x2   :  { %1268 = sst [smem:[#allocation14_spill]] %s1262_s3 }
   0x3   :  { %10 = vsyncpa [#allocation3], 0 }
   0x4   :  { %12 = vsyncpa [#allocation3 + $0x1], 0 }
   0x5   :  { %13 = vsyncpa [#allocation5], 0 }
   0x6   :  { %15 = vsyncpa [#allocation5 + $0x1], 0 }
   0x7   :  { %16 = vsyncpa [#allocation8], 0  ;;  %s1043_s18 = smov 0   ;;  %s1045_s19 = smov 0  }
   0x8   :  { %s1047_s20 = smov 0   ;;  %s1049_s21 = smov 0  }
   0x9 LB: > { %s1064_s22 = sadd.s32 1, %s1005_s21   ;;  %s29_s23 = sadd.s32 1, %s1001_s20  ;;  %s1005_s21 = sphi %s1049_s21, %s1281_s21   ;;  %s1001_s20 = sphi %s1047_s20, %s1280_s20   ;;  %s997_s19 = sphi %s1045_s19, %s1279_s19   ;;  %s993_s18 = sphi %s1043_s18, %s1278_s18  }
   0xa   : > { %s26_s24 = ssub.s32 %s1005_s21, %s1064_s22  ;;  %p36_p0 = scmp.ne.s32.totalorder %s1001_s20, %s997_s19 }
   0xb   : > { %p27_p1 = scmp.eq.s32.totalorder %s26_s24, 0  ;;  %p37_p2 = scmp.eq.s32.totalorder %s1005_s21, 0 }
   0xc   : > { %p799_p3 = scmp.lt.s32.totalorder %s1005_s21, 2  ;;  %s1077_s26 = sand.u32 1, %s1001_s20  }
   0xd   : > { %s1074_s25 = scalar_select %p27_p1, %s1001_s20, %s29_s23  }
   0xe   : > { %p38_p4 = por %p37_p2, %p36_p0  ;;  %s222_s27 = sand.u32 1, %s1005_s21  }
   0xf   : > { %1269 = sst [smem:[#allocation12_spill]] %s1074_s25  ;;  %s758_s28 = sshll.u32 %s1077_s26, 6 }
  0x10   : > { %p1081_p5 = pnand %p799_p3, %p38_p4  ;;  %s772_s30 = sshll.u32 %s1005_s21, 6 }
  0x11   : > { %s1271_s1 = sld [smem:[#allocation13_spill]]  ;;  %s226_s10 = scalar_lea.vmem [#allocation4], %s758_s28 }
  0x12   : > { %s234_s11 = sshll.u32 %s226_s10, 4  ;;  %s1091_s12 = scalar_lea.sflag [#allocation5], %s222_s27  ;;  %s235_s11 = int_to_ptr.vmem [resolvable:$true] %s234_s11 }
  0x13   : > { %p847_p7 = pneg %p1081_p5 }
  0x17   : > { %s231_s8 = scalar_lea.hbm %s1271_s1, %s772_s30  ;;  %s850_s17 = scalar_lea.hbm %s1271_s1, 128 }
  0x18   : > { %s232_s9 = sshll.u32 %s231_s8, 4  ;;  %s233_s9 = int_to_ptr.hbm [resolvable:$true] %s232_s9 }
  0x19   : > { %s843_s13 = sshra.s32 %s233_s9, 4  ;;  %s844_s13 = int_to_ptr.hbm [resolvable:$true] %s843_s13 }
  0x1a   : > { %s845_s14 = scalar_lea.hbm %s844_s13, 64  ;;  %p851_p10 = scmp.lt.s32.totalorder %s844_s13, %s1271_s1 }
  0x1b   : > { %p846_p6 = scmp.ne.s32.totalorder %s844_s13, %s845_s14  ;;  %p852_p11 = scmp.lt.s32.totalorder %s850_s17, %s845_s14 }
  0x1d   : > { %p848_p8 = pnand %p847_p7, %p846_p6  ;;  %p853_p12 = por %p852_p11, %p851_p10 }
  0x1f   : > { %p849_p9 = pneg %p848_p8 }
  0x21   : > { %p854_p13 = pnand %p853_p12, %p849_p9 }
  0x23   : > { %857 = shalt.err (!%p854_p13)
}
  0x24   : > { %s1265_s27 = smov 128   ;;  %s1266_s6 = smov 8  }
  0x25   : > { %794 = dma.hbm_to_vmem [thread:$0]  (!%p1081_p5), %s233_s9, 1024, %s235_s11, %s1091_s12, %s1265_s27, %s1265_s27, %s1266_s6  }
  0x26   : > { %s253_s10 = scalar_lea.hbm %s1261_s2, %s772_s30  ;;  %s248_s14 = scalar_lea.vmem [#allocation6], %s758_s28 }
  0x27   : > { %s254_s13 = sshll.u32 %s253_s10, 4  ;;  %s256_s15 = sshll.u32 %s248_s14, 4  ;;  %s1115_s13 = int_to_ptr.hbm [resolvable:$true] %s254_s13  ;;  %s1117_s15 = int_to_ptr.vmem [resolvable:$true] %s256_s15 }
  0x28   : > { %s1120_s16 = sadd.s32 4294967295, %s1005_s21   ;;  %p42_p1 = scmp.ne.s32.totalorder %s997_s19, %s993_s18 }
  0x29   : > { %p43_p0 = scmp.eq.s32.totalorder %s1120_s16, 0  ;;  %p753_p2 = scmp.ge.s32.totalorder %s1005_s21, 1 }
  0x2a   : > { %p173_p3 = scmp.lt.s32.totalorder %s1005_s21, 3  ;;  %s1273_s3 = sld [smem:[#allocation14_spill]] }
  0x2b   : > { %p1129_p4 = por %p43_p0, %p42_p1  ;;  %s1009_s18 = smov [#allocation7]  }
  0x2c   : > { %p1136_p6 = pnand %p753_p2, %p173_p3  ;;  %s186_s23 = sshll.u32 %s1009_s18, 4  ;;  %s187_s23 = int_to_ptr.vmem [resolvable:$true] %s186_s23 }
  0x2d   : > { %s756_s24 = sshll.u32 %s1077_s26, 3  ;;  %s757_s7 = sshll.u32 %s1005_s21, 3 }
  0x2e   : > { %p784_p8 = pneg %p1136_p6  ;;  %s1010_s8 = smov 256  }
  0x2f   : > { %s1011_s10 = smov 16   ;;  %s211_s9 = scalar_lea.hbm %s1259_s0, %s757_s7 }
  0x30   : > { %s184_s11 = sshll.u32 %s1273_s3, 4  ;;  %p785_p9 = pnand %p784_p8, %p43_p0  ;;  %s185_s11 = int_to_ptr.hbm [resolvable:$true] %s184_s11 }
  0x31   : > { %s207_s27 = scalar_lea.vmem [#allocation2], %s756_s24  ;;  %s213_s1 = sshll.u32 %s211_s9, 4  ;;  %s214_s1 = int_to_ptr.hbm [resolvable:$true] %s213_s1 }
  0x32   : > { %787 = dma.hbm_to_vmem [thread:$0]  (!%p785_p9), %s185_s11, 4096, %s187_s23, [#allocation8], %s1010_s8, %s1010_s8, %s1011_s10  }
  0x33   : > { %s215_s6 = sshll.u32 %s207_s27, 4  ;;  %s204_s3 = scalar_lea.sflag [#allocation3], %s1077_s26  ;;  %s216_s6 = int_to_ptr.vmem [resolvable:$true] %s215_s6 }
  0x34   : > { %s903_s18 = sshra.s32 %s214_s1, 4  ;;  %s910_s23 = scalar_lea.hbm %s1259_s0, 16  ;;  %s904_s18 = int_to_ptr.hbm [resolvable:$true] %s903_s18 }
  0x35   : > { %s905_s25 = scalar_lea.hbm %s904_s18, 8  ;;  %p911_p13 = scmp.lt.s32.totalorder %s904_s18, %s1259_s0 }
  0x36   : > { %p906_p10 = scmp.ne.s32.totalorder %s904_s18, %s905_s25  ;;  %p912_p1 = scmp.lt.s32.totalorder %s910_s23, %s905_s25 }
  0x38   : > { %p908_p11 = pnand %p906_p10, %p847_p7  ;;  %p913_p2 = por %p912_p1, %p911_p13 }
  0x3a   : > { %p909_p12 = pneg %p908_p11 }
  0x3c   : > { %p914_p3 = pnand %p913_p2, %p909_p12 }
  0x3e   : > { %917 = shalt.err (!%p914_p3)
}
  0x3f   : > { %791 = dma.hbm_to_vmem [thread:$0]  (!%p1081_p5), %s214_s1, 128, %s216_s6, %s204_s3  }
  0x40   : > { %s933_s26 = sshra.s32 %s1115_s13, 4  ;;  %s940_s25 = scalar_lea.hbm %s1261_s2, 128  ;;  %s934_s26 = int_to_ptr.hbm [resolvable:$true] %s933_s26 }
  0x41   : > { %s935_s27 = scalar_lea.hbm %s934_s26, 64  ;;  %p941_p11 = scmp.lt.s32.totalorder %s934_s26, %s1261_s2 }
  0x42   : > { %p936_p8 = scmp.ne.s32.totalorder %s934_s26, %s935_s27  ;;  %p942_p12 = scmp.lt.s32.totalorder %s940_s25, %s935_s27 }
  0x44   : > { %p938_p9 = pnand %p936_p8, %p847_p7  ;;  %p943_p13 = por %p942_p12, %p941_p11 }
  0x46   : > { %p939_p10 = pneg %p938_p9 }
  0x48   : > { %p944_p1 = pnand %p943_p13, %p939_p10 }
  0x4a   : > { %947 = shalt.err (!%p944_p1)
}
  0x4b   : > { %s1275_s1 = smov 8   ;;  %s1276_s3 = smov 128  }
  0x4c   : > { %797 = dma.hbm_to_vmem [thread:$0]  (!%p1081_p5), %s1115_s13, 1024, %s1117_s15, %s1091_s12, %s1276_s3, %s1276_s3, %s1275_s1  }
  0x4d   : > { %268 = sbr.rel (%p1136_p6) target bundleno = 533 (0x215), region = 40  ;;  %s270_s6 = sand.u32 (!%p1136_p6), 1, %s997_s19  }
  0x4e   : > { %s765_s9 = sshll.u32 (!%p1136_p6), %s270_s6, 3  ;;  %s271_s18 = scalar_lea.sflag (!%p1136_p6), [#allocation3], %s270_s6 }
  0x4f   : > { %s1182_s21 = scalar_lea.vmem (!%p1136_p6), [#allocation2], %s765_s9 }
  0x52   : > { %980 = dma.done.wait (%p1129_p4), %s271_s18, 128  }
  0x53   : > { %982 = vsyncadd (%p1129_p4), %s271_s18, 4294967168  ;;  %s280_s29 = sand.u32 1, %s1120_s16   ;;  %s766_s11 = sshll.u32 %s270_s6, 6 }
  0x54   : > { %s281_s12 = scalar_lea.sflag [#allocation5], %s280_s29  ;;  %s1189_s13 = scalar_lea.vmem [#allocation4], %s766_s11 }
  0x55   : > { %984 = dma.done.wait (%p1129_p4), %s281_s12, 2048  }
  0x56   : > { %986 = vsyncadd (%p1129_p4), %s281_s12, 4294965248  ;;  %s1195_s15 = scalar_lea.vmem [#allocation6], %s766_s11 }
  0x57   : > { %988 = dma.done.wait (%p43_p0), [#allocation8], 4096  }
  0x58   : > { %990 = vsyncadd (%p43_p0), [#allocation8], 4294963200  ;;  %v373_v0 = vld [vmem:[#allocation7 + $0xf0] sm:$0xff]  ;;  %v374_v1 = vld [vmem:[#allocation7 + $0xf8] sm:$0xff]  ;;  %vm617_vm0 = vcmask 1041409   ;;  %vm619_vm1 = vcmask 1042434  }
  0x59   : > { %v371_v2 = vld [vmem:[#allocation7 + $0xe0] sm:$0xff]  ;;  %375 = vmatpush.msra.mxu0 %v373_v0  ;;  %395 = vmatpush.msra.mxu1 %v374_v1  ;;  %v372_v3 = vld [vmem:[#allocation7 + $0xe8] sm:$0xff]  ;;  %v369_v4 = vld [vmem:[#allocation7 + $0xd0] sm:$0xff]  ;;  %p338_p5 = scmp.lt.s32.totalorder %s1120_s16, 1  ;;  %vm621_vm2 = vcmask 1043459   ;;  %vm623_vm3 = vcmask 1044484  }
  0x5a   : > { %v370_v5 = vld [vmem:[#allocation7 + $0xd8] sm:$0xff]  ;;  %v367_v6 = vld [vmem:[#allocation7 + $0xc0] sm:$0xff]  ;;  %v368_v7 = vld [vmem:[#allocation7 + $0xc8] sm:$0xff]  ;;  %vm625_vm4 = vcmask 1045509   ;;  %vm627_vm5 = vcmask 1046534   ;;  %vm629_vm6 = vcmask 1047559  }
  0x5b   : > { %376 = vmatpush.msra.mxu0 %v371_v2  ;;  %396 = vmatpush.msra.mxu1 %v372_v3  ;;  %v365_v8 = vld [vmem:[#allocation7 + $0xb0] sm:$0xff]  ;;  %v366_v9 = vld [vmem:[#allocation7 + $0xb8] sm:$0xff]  ;;  %v363_v10 = vld [vmem:[#allocation7 + $0xa0] sm:$0xff]  ;;  %s1283_s16 = smov (!%p338_p5, %s1120_s16), 1  ;;  %vm632_vm7 = vcmask 64512  }
  0x5c   : > { %v364_v11 = vld [vmem:[#allocation7 + $0xa8] sm:$0xff]  ;;  %v361_v12 = vld [vmem:[#allocation7 + $0x90] sm:$0xff]  ;;  %v362_v13 = vld [vmem:[#allocation7 + $0x98] sm:$0xff]  ;;  %s769_s23 = sshll.u32 %s1283_s16, 3 }
  0x5d   : > { %377 = vmatpush.msra.mxu0 %v369_v4  ;;  %397 = vmatpush.msra.mxu1 %v370_v5  ;;  %v842_v14 = vld [vmem:[%s1263_s4] ss:$0 sm:$0xff]  ;;  %v359_v15 = vld [vmem:[#allocation7 + $0x80] sm:$0xff]  ;;  %v360_v16 = vld [vmem:[#allocation7 + $0x88] sm:$0xff]  ;;  %s341_s26 = scalar_lea.vmem %s1264_s5, %s769_s23 }
  0x5e   : > { %v342_v17 = vld [vmem:[%s1182_s21] sm:$0xff]  ;;  %v355_v21 = vld [vmem:[#allocation7 + $0x60] sm:$0xff]  ;;  %v356_v22 = vld [vmem:[#allocation7 + $0x68] sm:$0xff] }
  0x5f   : > { %378 = vmatpush.msra.mxu0 %v367_v6  ;;  %398 = vmatpush.msra.mxu1 %v368_v7  ;;  %v419_v18 = vmul.f32 %v842_v14, %v342_v17  ;;  %v357_v19 = vld [vmem:[#allocation7 + $0x70] sm:$0xff]  ;;  %v358_v20 = vld [vmem:[#allocation7 + $0x78] sm:$0xff]  ;;  %v351_v25 = vld [vmem:[#allocation7 + $0x40] sm:$0xff] }
  0x60   : > { %v353_v23 = vld [vmem:[#allocation7 + $0x50] sm:$0xff]  ;;  %v354_v24 = vld [vmem:[#allocation7 + $0x58] sm:$0xff]  ;;  %v352_v26 = vld [vmem:[#allocation7 + $0x48] sm:$0xff] }
  0x61   : > { %379 = vmatpush.msra.mxu0 %v365_v8  ;;  %399 = vmatpush.msra.mxu1 %v366_v9  ;;  %v349_v27 = vld [vmem:[#allocation7 + $0x30] sm:$0xff]  ;;  %v350_v28 = vld [vmem:[#allocation7 + $0x38] sm:$0xff]  ;;  %v347_v29 = vld [vmem:[#allocation7 + $0x20] sm:$0xff] }
  0x62   : > { %420 = vadd.xlane.f32.xlu0 %v419_v18  ;;  %v348_v30 = vld [vmem:[#allocation7 + $0x28] sm:$0xff]  ;;  %v345_v31 = vld [vmem:[#allocation7 + $0x10] sm:$0xff]  ;;  %v346_v32 = vld [vmem:[#allocation7 + $0x18] sm:$0xff] }
  0x63   : > { %380 = vmatpush.msra.mxu0 %v363_v10  ;;  %400 = vmatpush.msra.mxu1 %v364_v11  ;;  %v343_v33 = vld [vmem:[#allocation7] sm:$0xff]  ;;  %v344_v34 = vld [vmem:[#allocation7 + $0x8] sm:$0xff]  ;;  %v425_v53 = vld [vmem:[%s1189_s13 + $0x18] sm:$0xff] }
  0x64   : > { %v478_v37 = vld [vmem:[%s1195_s15] sm:$0xff]  ;;  %v423_v43 = vld [vmem:[%s1189_s13 + $0x8] sm:$0xff]  ;;  %v424_v56 = vld [vmem:[%s1189_s13 + $0x10] sm:$0xff] }
  0x65   : > { %381 = vmatpush.msra.mxu0 %v361_v12  ;;  %401 = vmatpush.msra.mxu1 %v362_v13  ;;  %v422_v38 = vld [vmem:[%s1189_s13] sm:$0xff]  ;;  %v479_v51 = vld [vmem:[%s1195_s15 + $0x8] sm:$0xff]  ;;  %v481_v1 = vld [vmem:[%s1195_s15 + $0x18] sm:$0xff] }
  0x66   : > { %v426_v0 = vld [vmem:[%s1189_s13 + $0x20] sm:$0xff]  ;;  %v480_v3 = vld [vmem:[%s1195_s15 + $0x10] sm:$0xff]  ;;  %v483_v12 = vld [vmem:[%s1195_s15 + $0x28] sm:$0xff] }
  0x67   : > { %382 = vmatpush.msra.mxu0 %v359_v15  ;;  %402 = vmatpush.msra.mxu1 %v360_v16  ;;  %v427_v13 = vld [vmem:[%s1189_s13 + $0x28] sm:$0xff]  ;;  %v482_v15 = vld [vmem:[%s1195_s15 + $0x20] sm:$0xff] }
  0x69   : > { %383 = vmatpush.msra.mxu0 %v357_v19  ;;  %403 = vmatpush.msra.mxu1 %v358_v20 }
  0x6b   : > { %384 = vmatpush.msra.mxu0 %v355_v21  ;;  %404 = vmatpush.msra.mxu1 %v356_v22 }
  0x6d   : > { %385 = vmatpush.msra.mxu0 %v353_v23  ;;  %405 = vmatpush.msra.mxu1 %v354_v24  ;;  %v429_v24 = vld [vmem:[%s1189_s13 + $0x38] sm:$0xff] }
  0x6f   : > { %386 = vmatpush.msra.mxu0 %v351_v25  ;;  %406 = vmatpush.msra.mxu1 %v352_v26  ;;  %v484_v25 = vld [vmem:[%s1195_s15 + $0x30] sm:$0xff] }
  0x71   : > { %387 = vmatpush.msra.mxu0 %v349_v27  ;;  %407 = vmatpush.msra.mxu1 %v350_v28  ;;  %v428_v27 = vld [vmem:[%s1189_s13 + $0x30] sm:$0xff] }
  0x73   : > { %388 = vmatpush.msra.mxu0 %v347_v29  ;;  %408 = vmatpush.msra.mxu1 %v348_v30 }
  0x75   : > { %389 = vmatpush.msra.mxu0 %v345_v31  ;;  %409 = vmatpush.msra.mxu1 %v346_v32 }
  0x77   : > { %390 = vmatpush.msra.mxu0 %v343_v33  ;;  %410 = vmatpush.msra.mxu1 %v344_v34  ;;  %v485_v33 = vld [vmem:[%s1195_s15 + $0x38] sm:$0xff] }
  0x78   : > { %391 = vmatmul.f32.vlgmr.msra.gmra.mxu0 %v342_v17  ;;  %411 = vmatmul.f32.vlgmr.msra.gmra.mxu1 %v342_v17 }
  0xf5   : > { %v1205_v35 = vpop.f32.mrf.mxu0  ;;  %v1207_v36 = vpop.f32.mrf.mxu1 }
  0xf6   : > { %v494_v39 = vperm.slane %v1207_v36, 0  ;;  %v438_v40 = vperm.slane %v1205_v35, 0  ;;  %v431_v41 = vrot.slane %v1205_v35, 1  ;;  %v487_v42 = vrot.slane %v1207_v36, 1 }
  0xf7   : > { %v433_v47 = vrot.slane %v1205_v35, 3  ;;  %v432_v50 = vrot.slane %v1205_v35, 2  ;;  %v434_v58 = vrot.slane %v1205_v35, 4  ;;  %v489_v59 = vrot.slane %v1207_v36, 3 }
  0xf8   : > { %v510_v44 = vmul.f32 %v494_v39, %v478_v37  ;;  %v454_v45 = vmul.f32 %v438_v40, %v422_v38  ;;  %v439_v46 = vperm.slane %v431_v41, 0  ;;  %v495_v49 = vperm.slane %v487_v42, 0  ;;  %v421_v37 = vpop.xlane.xlu0 %420 }
  0xf9   : > { %v441_v52 = vperm.slane %v433_v47, 0  ;;  %v440_v55 = vperm.slane %v432_v50, 0  ;;  %v488_v61 = vrot.slane %v1207_v36, 2  ;;  %v442_v62 = vperm.slane %v434_v58, 0 }
  0xfa   : > { %518 = vadd.xlane.f32.xlu2 %v510_v44  ;;  %462 = vadd.xlane.f32.xlu0 %v454_v45  ;;  %v455_v48 = vmul.f32 %v439_v46, %v423_v43  ;;  %v511_v54 = vmul.f32 %v495_v49, %v479_v51  ;;  %v497_v63 = vperm.slane %v489_v59, 0  ;;  %v491_v6 = vrot.slane %v1207_v36, 5 }
  0xfb   : > { %v457_v57 = vmul.f32 %v441_v52, %v425_v53  ;;  %v456_v60 = vmul.f32 %v440_v55, %v424_v56  ;;  %v496_v2 = vperm.slane %v488_v61, 0  ;;  %v458_v4 = vmul.f32 %v442_v62, %v426_v0 }
  0xfc   : > { %464 = vadd.xlane.f32.xlu1 %v455_v48  ;;  %v513_v5 = vmul.f32 %v497_v63, %v481_v1  ;;  %v435_v7 = vrot.slane %v1205_v35, 5  ;;  %v490_v9 = vrot.slane %v1207_v36, 4  ;;  %v499_v10 = vperm.slane %v491_v6, 0 }
  0xfd   : > { %v512_v8 = vmul.f32 %v496_v2, %v480_v3  ;;  %v437_v18 = vrot.slane %v1205_v35, 7  ;;  %v492_v19 = vrot.slane %v1207_v36, 6  ;;  %v436_v21 = vrot.slane %v1205_v35, 6 }
  0xfe   : > { %v443_v11 = vperm.slane %v435_v7, 0  ;;  %v498_v14 = vperm.slane %v490_v9, 0  ;;  %v515_v16 = vmul.f32 %v499_v10, %v483_v12  ;;  %v493_v31 = vrot.slane %v1207_v36, 7 }
  0xff   : > { %v445_v22 = vperm.slane %v437_v18, 0  ;;  %v500_v23 = vperm.slane %v492_v19, 0  ;;  %v444_v26 = vperm.slane %v436_v21, 0  ;;  %v1012_v35 = vmov 0  }
 0x100   : > { %v459_v17 = vmul.f32 %v443_v11, %v427_v13  ;;  %v514_v20 = vmul.f32 %v498_v14, %v482_v15  ;;  %v501_v32 = vperm.slane %v493_v31, 0  ;;  %839 = vset.pattern.permute.xlu2 %v1012_v35  ;;  %840 = vset.pattern.permute.xlu0 %v1012_v35  ;;  %v543_v38 = vperm.slane %v421_v37, 0 }
 0x101   : > { %v461_v28 = vmul.f32 %v445_v22, %v429_v24  ;;  %v516_v29 = vmul.f32 %v500_v23, %v484_v25  ;;  %v460_v30 = vmul.f32 %v444_v26, %v428_v27  ;;  %841 = vset.pattern.permute.xlu1 %v1012_v35  ;;  %v544_v46 = vperm.slane %v421_v37, 1 }
 0x102   : > { %520 = vadd.xlane.f32.xlu0 %v511_v54  ;;  %468 = vadd.xlane.f32.xlu2 %v457_v57  ;;  %v517_v34 = vmul.f32 %v501_v32, %v485_v33  ;;  %v546_v53 = vperm.slane %v421_v37, 3  ;;  %v545_v57 = vperm.slane %v421_v37, 2  ;;  %v548_v0 = vperm.slane %v421_v37, 5 }
 0x103   : > { %v549_v11 = vperm.slane %v421_v37, 6  ;;  %v607_v23 = vlaneseq }
 0x104   : > { %466 = vadd.xlane.f32.xlu1 %v456_v60 }
 0x105   : > { %v608_v26 = vand.u32 127, %v607_v23 }
 0x10a   : > { %470 = vadd.xlane.f32.xlu0 %v458_v4  ;;  %524 = vadd.xlane.f32.xlu2 %v513_v5  ;;  %v547_v4 = vperm.slane %v421_v37, 4 }
 0x10c   : > { %522 = vadd.xlane.f32.xlu1 %v512_v8 }
 0x112   : > { %528 = vadd.xlane.f32.xlu0 %v515_v16  ;;  %472 = vadd.xlane.f32.xlu2 %v459_v17  ;;  %v550_v17 = vperm.slane %v421_v37, 7 }
 0x114   : > { %526 = vadd.xlane.f32.xlu1 %v514_v20 }
 0x11a   : > { %476 = vadd.xlane.f32.xlu0 %v461_v28  ;;  %530 = vadd.xlane.f32.xlu2 %v516_v29 }
 0x11c   : > { %474 = vadd.xlane.f32.xlu1 %v460_v30 }
 0x124   : > { %532 = vadd.xlane.f32.xlu1 %v517_v34 }
 0x16d   : > { %v519_v39 = vpop.xlane.xlu2 %518  ;;  %v463_v40 = vpop.xlane.xlu0 %462 }
 0x16e   : > { %v534_v41 = vadd.f32 %v519_v39, %v463_v40 }
 0x16f   : > { %v465_v42 = vpop.xlane.xlu1 %464 }
 0x170   : > { %v559_v43 = vadd.f32 %v543_v38, %v534_v41 }
 0x172   : > { %v567_v44 = vmul.f32 0.088388346, %v559_v43 }
 0x174   : > { %584 = vperm.xlu2 %839, %v567_v44  }
 0x175   : > { %v521_v45 = vpop.xlane.xlu0 %520  ;;  %v469_v36 = vpop.xlane.xlu2 %468 }
 0x176   : > { %v535_v47 = vadd.f32 %v521_v45, %v465_v42 }
 0x177   : > { %v467_v48 = vpop.xlane.xlu1 %466 }
 0x178   : > { %v560_v49 = vadd.f32 %v544_v46, %v535_v47 }
 0x17a   : > { %v568_v50 = vmul.f32 0.088388346, %v560_v49 }
 0x17c   : > { %587 = vperm.xlu0 %840, %v568_v50  }
 0x17d   : > { %v471_v51 = vpop.xlane.xlu0 %470  ;;  %v525_v52 = vpop.xlane.xlu2 %524 }
 0x17e   : > { %v537_v54 = vadd.f32 %v525_v52, %v469_v36 }
 0x17f   : > { %v523_v55 = vpop.xlane.xlu1 %522 }
 0x180   : > { %v562_v56 = vadd.f32 %v546_v53, %v537_v54  ;;  %v536_v58 = vadd.f32 %v523_v55, %v467_v48 }
 0x182   : > { %v570_v59 = vmul.f32 0.088388346, %v562_v56  ;;  %v561_v60 = vadd.f32 %v545_v57, %v536_v58 }
 0x184   : > { %v569_v61 = vmul.f32 0.088388346, %v561_v60  ;;  %593 = vperm.xlu2 %839, %v570_v59  }
 0x185   : > { %v529_v62 = vpop.xlane.xlu0 %528  ;;  %v473_v63 = vpop.xlane.xlu2 %472 }
 0x186   : > { %v539_v1 = vadd.f32 %v529_v62, %v473_v63  ;;  %590 = vperm.xlu1 %841, %v569_v61  }
 0x187   : > { %v527_v2 = vpop.xlane.xlu1 %526 }
 0x188   : > { %v564_v3 = vadd.f32 %v548_v0, %v539_v1  ;;  %v538_v5 = vadd.f32 %v527_v2, %v471_v51 }
 0x18a   : > { %v563_v6 = vadd.f32 %v547_v4, %v538_v5  ;;  %v572_v7 = vmul.f32 0.088388346, %v564_v3 }
 0x18c   : > { %v571_v8 = vmul.f32 0.088388346, %v563_v6 }
 0x18d   : > { %v531_v9 = vpop.xlane.xlu2 %530  ;;  %v477_v15 = vpop.xlane.xlu0 %476 }
 0x18e   : > { %599 = vperm.xlu1 %841, %v572_v7   ;;  %596 = vperm.xlu2 %839, %v571_v8  }
 0x18f   : > { %v475_v10 = vpop.xlane.xlu1 %474 }
 0x190   : > { %v540_v12 = vadd.f32 %v531_v9, %v475_v10 }
 0x192   : > { %v565_v13 = vadd.f32 %v549_v11, %v540_v12 }
 0x194   : > { %v573_v14 = vmul.f32 0.088388346, %v565_v13 }
 0x196   : > { %602 = vperm.xlu2 %839, %v573_v14  }
 0x197   : > { %v533_v16 = vpop.xlane.xlu1 %532 }
 0x198   : > { %v541_v18 = vadd.f32 %v533_v16, %v477_v15 }
 0x19a   : > { %v566_v19 = vadd.f32 %v550_v17, %v541_v18 }
 0x19c   : > { %v574_v20 = vmul.f32 0.088388346, %v566_v19 }
 0x19e   : > { %605 = vperm.xlu1 %841, %v574_v20  }
 0x1ce   : > { %v585_v21 = vpop.permute.xlu2 %584 }
 0x1cf   : > { %v609_v30 = vperm.slane %v585_v21, %v608_v26 }
 0x1de   : > { %v594_v22 = vpop.permute.xlu2 %593 }
 0x1df   : > { %v612_v34 = vperm.slane %v594_v22, %v608_v26 }
 0x1e8   : > { %v597_v27 = vpop.permute.xlu2 %596 }
 0x1e9   : > { %v613_v38 = vperm.slane %v597_v27, %v608_v26 }
 0x1ee   : > { %v588_v25 = vpop.permute.xlu0 %587 }
 0x1ef   : > { %v610_v28 = vperm.slane %v588_v25, %v608_v26 }
 0x1f0   : > { %v603_v39 = vpop.permute.xlu2 %602 }
 0x1f1   : > { %v618_v31 = vsel %vm617_vm0, %v610_v28, %v609_v30  ;;  %v615_v42 = vperm.slane %v603_v39, %v608_v26 }
 0x1f8   : > { %v591_v24 = vpop.permute.xlu1 %590 }
 0x1f9   : > { %v611_v29 = vperm.slane %v591_v24, %v608_v26 }
 0x1fb   : > { %v620_v32 = vsel %vm619_vm1, %v611_v29, %v618_v31 }
 0x1fc   : > { %v622_v35 = vsel %vm621_vm2, %v612_v34, %v620_v32 }
 0x1fd   : > { %v624_v40 = vsel %vm623_vm3, %v613_v38, %v622_v35 }
 0x200   : > { %v600_v33 = vpop.permute.xlu1 %599 }
 0x201   : > { %v614_v37 = vperm.slane %v600_v33, %v608_v26 }
 0x203   : > { %v626_v41 = vsel %vm625_vm4, %v614_v37, %v624_v40 }
 0x204   : > { %v628_v45 = vsel %vm627_vm5, %v615_v42, %v626_v41 }
 0x210   : > { %v606_v43 = vpop.permute.xlu1 %605 }
 0x211   : > { %v616_v44 = vperm.slane %v606_v43, %v608_v26 }
 0x213   : > { %v630_v36 = vsel %vm629_vm6, %v616_v44, %v628_v45 }
 0x214   : > { %633 = vst.msk [vmem:[%s341_s26] sm:$0xff] %vm632_vm7, %v630_v36 }
 0x215 PF: > { %s1277_s27 = sld [smem:[#allocation12_spill]]  ;;  %p19_p7 = scmp.ge.s32.totalorder %s1064_s22, 4  }
 0x216   : > { %s1278_s18 = smov %s997_s19  ;;  %s1279_s19 = smov %s1001_s20 }
 0x217   : > { %s1281_s21 = smov %s1064_s22  ;;  %21 = sbr.rel (!%p19_p7) target bundleno = 9 (0x9), region = 108 }
 0x21b   : > { %s1280_s20 = smov %s1277_s27 }
 0x21c   :  { %653 = vsyncpa [#allocation3], 1 }
 0x21d   :  { %655 = vsyncpa [#allocation3 + $0x1], 1 }
 0x21e   :  { %656 = vsyncpa [#allocation5], 1 }
 0x21f   :  { %658 = vsyncpa [#allocation5 + $0x1], 1 }
 0x220   :  { %659 = vsyncpa [#allocation8], 1 }

</bundles_post_ra>
